<compile_context>
chip_gen: v7x
topology: tpu7x:2x2x1
jax: 0.10.0
libtpu: 0.0.40
codegen_flags: <defaults>
</compile_context>

<pallas_src>
import functools

import jax
import jax.numpy as jnp
from jax.experimental import pallas as pl
from jax.experimental.pallas import tpu as pltpu


# ---------------------------------------------------------------------------
# Kernels
# ---------------------------------------------------------------------------

def _sep_conv_kernel_grid(x_ref, wf_ref, o_ref, *,
                          kh_size, kw_size, dilation, wp, l_out):
    """grid=(N,) variant: one batch element per grid step (2-TC / v7x megacore).

    x_ref:  (1, C, Lx)       zero-padded, spatially flattened image
    wf_ref: (Cout, KH*KW*C)  fused (pointwise x depthwise) weights
    o_ref:  (1, Cout, L_out) lane-dense output in padded-flat space
    """
    x = x_ref[0]                                   # (C, Lx), stays in vregs
    blocks = []
    for kh in range(kh_size):
        for kw in range(kw_size):
            # 2-D shift (kh*d, kw*d) == flat lane shift by kh*d*Wp + kw*d.
            off = kh * dilation * wp + kw * dilation
            blocks.append(x[:, off:off + l_out])   # (C, L_out)
    col = jnp.concatenate(blocks, axis=0)          # (KH*KW*C, L_out), in vregs
    o_ref[0] = jnp.dot(wf_ref[...], col,
                       preferred_element_type=jnp.float32).astype(o_ref.dtype)


def _sep_conv_kernel_fused(x_ref, wf_ref, o_ref, *,
                           n_batch, kh_size, kw_size, dilation, wp, lx, l_out):
    """grid=(1,) variant: batch fused into lanes (single-TC v5e/v6e).

    x_ref:  (C, N*Lx)        channel-major, batches contiguous along lanes
    wf_ref: (Cout, KH*KW*C)
    o_ref:  (Cout, N*L_out)  lane-dense; column index = b*L_out + r*Wp + j
    """
    x = x_ref[...]                                 # (C, N*Lx)
    blocks = []
    for kh in range(kh_size):
        for kw in range(kw_size):
            off = kh * dilation * wp + kw * dilation
            parts = [x[:, b * lx + off: b * lx + off + l_out]
                     for b in range(n_batch)]      # N x (C, L_out), static slices
            blocks.append(parts[0] if n_batch == 1
                          else jnp.concatenate(parts, axis=1))
    col = jnp.concatenate(blocks, axis=0)          # (KH*KW*C, N*L_out)
    o_ref[...] = jnp.dot(wf_ref[...], col,
                         preferred_element_type=jnp.float32).astype(o_ref.dtype)


# ---------------------------------------------------------------------------
# Wrapper
# ---------------------------------------------------------------------------

def _lane_dense_width(w_min, h_out):
    """Smallest wp >= w_min such that h_out*wp is a multiple of 128 lanes."""
    wp = w_min
    while (h_out * wp) % 128 != 0:
        wp += 1
    return wp


def _tensorcores_per_chip():
    """2 TensorCores/chip on v7x-class parts, otherwise 1 (v5e/v6e)."""
    try:
        kind = jax.devices()[0].device_kind.lower()
    except Exception:
        return 1
    return 2 if ("v7" in kind or "7x" in kind) else 1


@functools.partial(jax.jit,
                   static_argnames=("stride", "padding", "dilation", "fuse_batch"))
def _separable_conv2d_impl(x, w_dw, w_pw, *, stride, padding, dilation,
                           fuse_batch):
    assert stride == 1, "stride > 1 not implemented"  # TODO(synk): strided gather
    n, c, h, w = x.shape
    kh, kw = w_dw.shape[1], w_dw.shape[2]
    cout = w_pw.shape[0]

    hp = h + 2 * padding
    h_out = hp - dilation * (kh - 1)
    w_out = (w + 2 * padding) - dilation * (kw - 1)

    # Lane-dense padded width: wp >= w + 2*padding and h_out*wp % 128 == 0, so the
    # per-batch flat output L_out = h_out*wp is stored with unmasked full vregs.
    wp = _lane_dense_width(w + 2 * padding, h_out)
    l_out = h_out * wp

    # Extra zero rows at the bottom so every flat-shifted window of length L_out
    # stays in bounds (max flat shift = (kh-1)*d*wp + (kw-1)*d).
    extra = pl.cdiv((kw - 1) * dilation, wp)
    lx = (hp + extra) * wp

    xp = jnp.pad(x, ((0, 0), (0, 0),
                     (padding, padding + extra),
                     (padding, wp - w - padding)))          # (N, C, hp+extra, wp)

    # Fuse depthwise into pointwise weights.  Row order (tap-major, channel-minor)
    # matches the im2col row order built inside the kernels.
    wdw_t = jnp.transpose(w_dw, (1, 2, 0)).reshape(kh * kw, c)       # (taps, C)
    wf = (w_pw[:, None, :] * wdw_t[None, :, :]).reshape(cout, kh * kw * c)

    flops = 2 * n * cout * (c * kh * kw) * l_out
    bytes_accessed = (n * c * lx * x.dtype.itemsize
                      + wf.size * wf.dtype.itemsize
                      + n * cout * l_out * x.dtype.itemsize)
    cost = pl.CostEstimate(flops=flops, transcendentals=0,
                           bytes_accessed=bytes_accessed)

    if fuse_batch:
        # Single-TC chips: one kernel invocation, batch fused into lanes.
        x_flat = jnp.transpose(xp, (1, 0, 2, 3)).reshape(c, n * lx)
        kernel = functools.partial(
            _sep_conv_kernel_fused, n_batch=n, kh_size=kh, kw_size=kw,
            dilation=dilation, wp=wp, lx=lx, l_out=l_out)
        out_flat = pl.pallas_call(
            kernel,
            out_shape=jax.ShapeDtypeStruct((cout, n * l_out), x.dtype),
            grid_spec=pltpu.PrefetchScalarGridSpec(
                num_scalar_prefetch=0,
                grid=(1,),
                in_specs=[
                    pl.BlockSpec((c, n * lx), lambda i: (0, 0)),
                    pl.BlockSpec((cout, kh * kw * c), lambda i: (0, 0)),
                ],
                out_specs=pl.BlockSpec((cout, n * l_out), lambda i: (0, 0)),
            ),
            compiler_params=pltpu.CompilerParams(
                dimension_semantics=("arbitrary",)),
            cost_estimate=cost,
        )(x_flat, wf)
        out = jnp.transpose(out_flat.reshape(cout, n, h_out, wp), (1, 0, 2, 3))
    else:
        # 2-TC chips (v7x): batch grid axis shards across the TensorCores.
        x_flat = xp.reshape(n, c, lx)
        kernel = functools.partial(
            _sep_conv_kernel_grid, kh_size=kh, kw_size=kw,
            dilation=dilation, wp=wp, l_out=l_out)
        out_flat = pl.pallas_call(
            kernel,
            out_shape=jax.ShapeDtypeStruct((n, cout, l_out), x.dtype),
            grid_spec=pltpu.PrefetchScalarGridSpec(
                num_scalar_prefetch=0,
                grid=(n,),
                in_specs=[
                    pl.BlockSpec((1, c, lx), lambda b: (b, 0, 0)),
                    pl.BlockSpec((cout, kh * kw * c), lambda b: (0, 0)),
                ],
                out_specs=pl.BlockSpec((1, cout, l_out), lambda b: (b, 0, 0)),
            ),
            compiler_params=pltpu.CompilerParams(
                dimension_semantics=("parallel",)),
            cost_estimate=cost,
        )(x_flat, wf)
        out = out_flat.reshape(n, cout, h_out, wp)

    # Drop the lane-pad columns (wrapper-side layout plumbing only).
    return out[:, :, :, :w_out]


def separable_conv2d(x, w_dw, w_pw, *, stride=1, padding=0, dilation=1,
                     fuse_batch=None):
    """x: (N, C, H, W); w_dw: (C, KH, KW); w_pw: (Cout, C). bias-free, stride=1."""
    if fuse_batch is None:
        # Single-TC (v5e/v6e): fuse batch into lanes; 2-TC (v7x): parallel grid.
        fuse_batch = _tensorcores_per_chip() < 2
    return _separable_conv2d_impl(x, w_dw, w_pw, stride=stride, padding=padding,
                                  dilation=dilation, fuse_batch=bool(fuse_batch))


# ---------------------------------------------------------------------------
# Reference + test
# ---------------------------------------------------------------------------

def _reference(x, w_dw, w_pw, *, padding, dilation):
    c = x.shape[1]
    dw = jax.lax.conv_general_dilated(
        x, w_dw[:, None, :, :],               # (C, 1, KH, KW)
        window_strides=(1, 1),
        padding=((padding, padding), (padding, padding)),
        rhs_dilation=(dilation, dilation),
        dimension_numbers=("NCHW", "OIHW", "NCHW"),
        feature_group_count=c,
    )
    pw = jax.lax.conv_general_dilated(
        dw, w_pw[:, :, None, None],           # (Cout, C, 1, 1)
        window_strides=(1, 1),
        padding="VALID",
        dimension_numbers=("NCHW", "OIHW", "NCHW"),
    )
    return pw


if __name__ == "__main__":
    # Module config: in_channels=4, out_channels=8, kernel_size=3, stride=1,
    # padding=1, dilation=1, bias=False.
    N, C, H, W = 2, 4, 16, 16
    COUT, K, PAD, DIL = 8, 3, 1, 1

    key = jax.random.PRNGKey(0)
    kx, kdw, kpw = jax.random.split(key, 3)
    x = jax.random.normal(kx, (N, C, H, W), dtype=jnp.float32)
    # conv1.weight in PyTorch: (C, 1, K, K)     -> stored here as (C, K, K)
    w_dw = jax.random.normal(kdw, (C, K, K), dtype=jnp.float32) * 0.1
    # pointwise.weight in PyTorch: (COUT, C, 1, 1) -> stored here as (COUT, C)
    w_pw = jax.random.normal(kpw, (COUT, C), dtype=jnp.float32) * 0.1

    ref = _reference(x, w_dw, w_pw, padding=PAD, dilation=DIL)

    # Validate both grid strategies (v7x-style parallel batch grid AND the
    # single-TC batch-in-lanes fusion) on whatever chip we are running on.
    for fuse in (False, True):
        out = separable_conv2d(x, w_dw, w_pw, stride=1, padding=PAD,
                               dilation=DIL, fuse_batch=fuse)
        out = jax.block_until_ready(out)
        assert out.shape == (N, COUT, H, W), (fuse, out.shape)
        err = float(jnp.max(jnp.abs(out - ref)))
        assert jnp.allclose(out, ref, atol=1e-4, rtol=1e-4), (fuse, err)

    # Auto-selected path (chip-dependent), run once more for good measure.
    out = jax.block_until_ready(
        separable_conv2d(x, w_dw, w_pw, stride=1, padding=PAD, dilation=DIL))
    assert jnp.allclose(out, ref, atol=1e-4, rtol=1e-4)

    print("KERNEL_OK")
</pallas_src>

<mosaic_0001>
module attributes {stable_mosaic.version = 11 : i64} {
  func.func @_sep_conv_kernel_grid(%arg0: i32, %arg1: memref<1x4x456xf32, #tpu.memory_space<vmem>>, %arg2: memref<8x36xf32, #tpu.memory_space<vmem>>, %arg3: memref<1x8x384xf32, #tpu.memory_space<vmem>>) attributes {dimension_semantics = [#tpu.dimension_semantics<parallel>], iteration_bounds = array<i64: 2>, scalar_prefetch = 0 : i64, scratch_operands = 0 : i64, tpu.core_type = #tpu.core_type<tc>, window_params = [{transform_indices = @transform_0, window_bounds = array<i64: 1, 4, 456>}, {pipeline_mode = #tpu.pipeline_mode<synchronous>, transform_indices = @transform_1, window_bounds = array<i64: 8, 36>}, {transform_indices = @transform_2, window_bounds = array<i64: 1, 8, 384>}]} {
    %c0 = arith.constant 0 : index
    %c0_0 = arith.constant 0 : index
    %c0_1 = arith.constant 0 : index
    %0 = vector.load %arg1[%c0, %c0_0, %c0_1] : memref<1x4x456xf32, #tpu.memory_space<vmem>>, vector<1x4x456xf32>
    %1 = vector.shape_cast %0 : vector<1x4x456xf32> to vector<4x456xf32>
    %2 = vector.extract_strided_slice %1 {offsets = [0, 0], sizes = [4, 384], strides = [1, 1]} : vector<4x456xf32> to vector<4x384xf32>
    %3 = vector.extract_strided_slice %1 {offsets = [0, 1], sizes = [4, 384], strides = [1, 1]} : vector<4x456xf32> to vector<4x384xf32>
    %4 = vector.extract_strided_slice %1 {offsets = [0, 2], sizes = [4, 384], strides = [1, 1]} : vector<4x456xf32> to vector<4x384xf32>
    %5 = vector.extract_strided_slice %1 {offsets = [0, 24], sizes = [4, 384], strides = [1, 1]} : vector<4x456xf32> to vector<4x384xf32>
    %6 = vector.extract_strided_slice %1 {offsets = [0, 25], sizes = [4, 384], strides = [1, 1]} : vector<4x456xf32> to vector<4x384xf32>
    %7 = vector.extract_strided_slice %1 {offsets = [0, 26], sizes = [4, 384], strides = [1, 1]} : vector<4x456xf32> to vector<4x384xf32>
    %8 = vector.extract_strided_slice %1 {offsets = [0, 48], sizes = [4, 384], strides = [1, 1]} : vector<4x456xf32> to vector<4x384xf32>
    %9 = vector.extract_strided_slice %1 {offsets = [0, 49], sizes = [4, 384], strides = [1, 1]} : vector<4x456xf32> to vector<4x384xf32>
    %10 = vector.extract_strided_slice %1 {offsets = [0, 50], sizes = [4, 384], strides = [1, 1]} : vector<4x456xf32> to vector<4x384xf32>
    %11 = tpu.concatenate %2, %3, %4, %5, %6, %7, %8, %9, %10 in 0 : vector<4x384xf32>, vector<4x384xf32>, vector<4x384xf32>, vector<4x384xf32>, vector<4x384xf32>, vector<4x384xf32>, vector<4x384xf32>, vector<4x384xf32>, vector<4x384xf32> -> vector<36x384xf32>
    %c0_2 = arith.constant 0 : index
    %c0_3 = arith.constant 0 : index
    %12 = vector.load %arg2[%c0_2, %c0_3] : memref<8x36xf32, #tpu.memory_space<vmem>>, vector<8x36xf32>
    %cst = arith.constant dense<0.000000e+00> : vector<8x384xf32>
    %13 = tpu.matmul %12, %11, %cst {dimension_numbers = #tpu.dot_dimension_numbers<[1], [0], [0], [1], [0, 0, 1, 1], [], []>} : vector<8x36xf32>, vector<36x384xf32>, vector<8x384xf32> -> vector<8x384xf32>
    %c0_4 = arith.constant 0 : index
    %c0_5 = arith.constant 0 : index
    %c0_6 = arith.constant 0 : index
    %14 = vector.load %arg3[%c0_4, %c0_5, %c0_6] : memref<1x8x384xf32, #tpu.memory_space<vmem>>, vector<1x8x384xf32>
    %15 = vector.shape_cast %14 : vector<1x8x384xf32> to vector<8x384xf32>
    %16 = vector.shape_cast %13 : vector<8x384xf32> to vector<1x8x384xf32>
    tpu.vector_store %arg3[%c0_4, %c0_5, %c0_6], %16 {strides = array<i32>} : memref<1x8x384xf32, #tpu.memory_space<vmem>>, vector<1x8x384xf32>,
    return
  }
  func.func @transform_0(%arg0: i32) -> (i32, i32, i32) {
    %c0_i32 = arith.constant 0 : i32
    %c0_i32_0 = arith.constant 0 : i32
    %c0_i32_1 = arith.constant 0 : i32
    return %arg0, %c0_i32, %c0_i32_0 : i32, i32, i32
  }
  func.func @transform_1(%arg0: i32) -> (i32, i32) {
    %c0_i32 = arith.constant 0 : i32
    %c0_i32_0 = arith.constant 0 : i32
    %c0_i32_1 = arith.constant 0 : i32
    return %c0_i32, %c0_i32_0 : i32, i32
  }
  func.func @transform_2(%arg0: i32) -> (i32, i32, i32) {
    %c0_i32 = arith.constant 0 : i32
    %c0_i32_0 = arith.constant 0 : i32
    %c0_i32_1 = arith.constant 0 : i32
    return %arg0, %c0_i32, %c0_i32_0 : i32, i32, i32
  }
}

</mosaic_0001>

<bundles_post_ra>
// kernel: _separable_conv2d_impl.1
= control target key start
LH: loop header
LB: loop body
LE: loop exit
PB: predicated region body
PF: predicated region fallthrough
CT: control target
= control target key end

     0   :  { %s670_s9 = smov 0   ;;  %s758_s0 = inlined_call_operand.vmem [shape: f32[2,4,456], index: 0, kind: input, shape index: {}]   ;;  %s759_s1 = inlined_call_operand.vmem [shape: f32[8,36], index: 1, kind: input, shape index: {}]   ;;  %s760_s2 = inlined_call_operand.vmem [shape: f32[2,8,384], index: 2, kind: output, shape index: {}]  }
   0x1 LB: > { %s493_s10 = sadd.s32 4294967295, %s642_s9   ;;  %p497_p0 = scmp.ge.s32.totalorder %s642_s9, 1  ;;  %s642_s9 = sphi %s670_s9, %s12_s9  }
   0x2   : > { %p112_p1 = scmp.lt.s32.totalorder %s642_s9, 3 }
   0x4   : > { %p113_p2 = pnand %p497_p0, %p112_p1 }
   0x5   : > { %p134_p3 = scmp.lt.s32.totalorder (!%p113_p2), %s493_s10, 1  ;;  %s644_s15 = smov (!%p113_p2), 104   ;;  %v646_v9 = vmov (!%p113_p2), 0.0|0.0   ;;  %v652_v11 = vmov (!%p113_p2), 0.0   ;;  %vm653_vm0 = vmmov (!%p113_p2), 0   ;;  %vm160_vm1 = vcmask (!%p113_p2), 1039360  }
   0x6   : > { %116 = sbr.rel (%p113_p2) target bundleno = 385 (0x181), region = 28  ;;  %s645_s16 = smov (!%p113_p2), 127   ;;  %536 = vmatprep.subr.bf16.mxu1 (!%p113_p2), %v646_v9  ;;  %358 = vmatprep.mubr.f32.mxu0 (!%p113_p2), %v652_v11  ;;  %vm176_vm2 = vcmask (!%p113_p2), 1031168   ;;  %vm191_vm3 = vcmask (!%p113_p2), 850944   ;;  %vm270_vm4 = vcmask (!%p113_p2), 1043456   ;;  %vm221_vm5 = vcmask (!%p113_p2), 834560  }
   0x7   : > { %s647_s17 = smov (!%p113_p2), 126   ;;  %s648_s18 = smov (!%p113_p2), 102   ;;  %525 = vmatprep.mubr.msk.f32.mxu1 (!%p113_p2), %vm653_vm0, %v652_v11  ;;  %vm206_vm6 = vcmask (!%p113_p2), 842752   ;;  %vm251_vm7 = vcmask (!%p113_p2), 646144   ;;  %vm236_vm8 = vcmask (!%p113_p2), 654336   ;;  %vm266_vm9 = vcmask (!%p113_p2), 637952  }
   0x8   : > { %s649_s19 = smov (!%p113_p2), 103   ;;  %s650_s20 = smov (!%p113_p2), 79   ;;  %vm284_vm10 = vcmask (!%p113_p2), 293888  }
   0x9   : > { %s651_s21 = smov (!%p113_p2), 80   ;;  %s654_s22 = smov (!%p113_p2), 78  }
   0xd   : > { %s762_s10 = smov (!%p134_p3, %s493_s10), 1 }
   0xe   : > { %s508_s11 = sshll.u32 %s762_s10, 4  ;;  %s542_s25 = smul.u32 24, %s762_s10 }
   0xf   : > { %s138_s14 = scalar_lea.vmem %s758_s0, %s508_s11 }
  0x10   : > { %v684_v0 = vld [vmem:[%s138_s14] sm:$0xff]  ;;  %v686_v1 = vld [vmem:[%s138_s14 + $0x8] sm:$0xff]  ;;  %s143_s28 = scalar_lea.vmem %s760_s2, %s542_s25 }
  0x11   : > { %v151_v2 = vcombine.low %v686_v1, %v686_v1  ;;  %v150_v3 = vcombine.low %v684_v0, %v684_v0  ;;  %v148_v4 = vcombine.high %v684_v0, %v684_v0  ;;  %v167_v8 = vcombine.high %v686_v1, %v686_v1 }
  0x13   : > { %v572_v5 = vpack.i.bf16 %v151_v2, %v684_v0  ;;  %v577_v6 = vpack.i.bf16 %v686_v1, %v150_v3  ;;  %v567_v7 = vpack.i.bf16 %v686_v1, %v148_v4  ;;  %v582_v10 = vpack.i.bf16 %v167_v8, %v684_v0 }
  0x15   : > { %573 = vrot.lane.b32.xlu1 %v572_v5, %s644_s15  ;;  %563 = vrot.lane.b32.xlu0 %v572_v5, %s645_s16 }
  0x19   : > { %578 = vrot.lane.b32.xlu1 %v577_v6, %s645_s16  ;;  %568 = vrot.lane.b32.xlu0 %v567_v7, %s647_s17 }
  0x1d   : > { %588 = vrot.lane.b32.xlu1 %v577_v6, %s644_s15  ;;  %583 = vrot.lane.b32.xlu0 %v582_v10, %s647_s17 }
  0x21   : > { %598 = vrot.lane.b32.xlu1 %v572_v5, %s648_s18  ;;  %593 = vrot.lane.b32.xlu0 %v567_v7, %s649_s19 }
  0x25   : > { %608 = vrot.lane.b32.xlu1 %v572_v5, %s650_s20  ;;  %603 = vrot.lane.b32.xlu0 %v567_v7, %s651_s21 }
  0x29   : > { %618 = vrot.lane.b32.xlu1 %v577_v6, %s648_s18  ;;  %613 = vrot.lane.b32.xlu0 %v582_v10, %s649_s19 }
  0x2d   : > { %628 = vrot.lane.b32.xlu1 %v577_v6, %s650_s20  ;;  %623 = vrot.lane.b32.xlu0 %v582_v10, %s651_s21 }
  0x31   : > { %262 = vrot.lane.b32.xlu1 %v686_v1, %s654_s22  ;;  %260 = vrot.lane.b32.xlu0 %v148_v4, %s654_s22 }
  0x35   : > { %264 = vrot.lane.b32.xlu1 %v167_v8, %s654_s22  ;;  %258 = vrot.lane.b32.xlu0 %v684_v0, %s654_s22 }
  0x87   : > { %v574_v12 = vpop.permute.xlu1 %573  ;;  %v564_v13 = vpop.permute.xlu0 %563 }
  0x88   : > { %v566_v14 = vunpack.i.h.bf16 %v564_v13  ;;  %v565_v15 = vunpack.i.l.bf16 %v564_v13  ;;  %v576_v16 = vunpack.i.h.bf16 %v574_v12  ;;  %v575_v17 = vunpack.i.l.bf16 %v574_v12 }
  0x8a   : > { %v162_v20 = vsel %vm160_vm1, %v565_v15, %v566_v14  ;;  %v193_v26 = vsel %vm191_vm3, %v575_v17, %v576_v16 }
  0x8b   : > { %v579_v18 = vpop.permute.xlu1 %578  ;;  %v569_v19 = vpop.permute.xlu0 %568  ;;  %v272_v29 = vsel %vm270_vm4, %v148_v4, %v162_v20 }
  0x8c   : > { %v581_v21 = vunpack.i.h.bf16 %v579_v18  ;;  %v580_v22 = vunpack.i.l.bf16 %v579_v18  ;;  %v571_v23 = vunpack.i.h.bf16 %v569_v19  ;;  %v570_v24 = vunpack.i.l.bf16 %v569_v19 }
  0x8e   : > { %v178_v25 = vsel %vm176_vm2, %v570_v24, %v571_v23  ;;  %v161_v31 = vsel %vm160_vm1, %v580_v22, %v565_v15  ;;  %v163_v32 = vsel %vm160_vm1, %v566_v14, %v581_v21 }
  0x8f   : > { %v589_v27 = vpop.permute.xlu1 %588  ;;  %v584_v28 = vpop.permute.xlu0 %583  ;;  %v275_v30 = vsel %vm270_vm4, %v178_v25, %v193_v26  ;;  %v271_v44 = vsel %vm270_vm4, %v684_v0, %v161_v31  ;;  %v273_v46 = vsel %vm270_vm4, %v686_v1, %v163_v32 }
  0x90   : > { %v591_v33 = vunpack.i.h.bf16 %v589_v27  ;;  %v590_v34 = vunpack.i.l.bf16 %v589_v27  ;;  %v586_v35 = vunpack.i.h.bf16 %v584_v28  ;;  %v585_v36 = vunpack.i.l.bf16 %v584_v28 }
  0x91   : > { %v528_v37 = vpack.c.bf16 %v275_v30, %v272_v29 }
  0x92   : > { %v177_v38 = vsel %vm176_vm2, %v585_v36, %v570_v24  ;;  %v192_v39 = vsel %vm191_vm3, %v590_v34, %v575_v17  ;;  %v179_v40 = vsel %vm176_vm2, %v571_v23, %v586_v35  ;;  %v194_v41 = vsel %vm191_vm3, %v576_v16, %v591_v33 }
  0x93   : > { %529 = vmatprep.subr.bf16.mxu0 %v528_v37  ;;  %v599_v42 = vpop.permute.xlu1 %598  ;;  %v594_v43 = vpop.permute.xlu0 %593  ;;  %v274_v45 = vsel %vm270_vm4, %v177_v38, %v192_v39  ;;  %v276_v47 = vsel %vm270_vm4, %v179_v40, %v194_v41  ;;  %v283_v37 = vld [vmem:[%s759_s1] sm:$0xff] }
  0x94   : > { %v601_v48 = vunpack.i.h.bf16 %v599_v42  ;;  %v600_v49 = vunpack.i.l.bf16 %v599_v42  ;;  %v596_v50 = vunpack.i.h.bf16 %v594_v43  ;;  %v595_v51 = vunpack.i.l.bf16 %v594_v43 }
  0x95   : > { %v530_v52 = vpack.c.bf16 %v274_v45, %v271_v44  ;;  %v537_v53 = vpack.c.bf16 %v276_v47, %v273_v46 }
  0x96   : > { %v223_v54 = vsel %vm221_vm5, %v600_v49, %v601_v48  ;;  %v208_v55 = vsel %vm206_vm6, %v595_v51, %v596_v50 }
  0x97   : > { %531 = vmatpush1.bf16.msra.mxu0 %v530_v52  ;;  %538 = vmatpush3.bf16.msra.mxu1 %v537_v53  ;;  %v609_v56 = vpop.permute.xlu1 %608  ;;  %v604_v57 = vpop.permute.xlu0 %603  ;;  %v278_v2 = vsel %vm270_vm4, %v208_v55, %v223_v54 }
  0x98   : > { %v611_v58 = vunpack.i.h.bf16 %v609_v56  ;;  %v610_v59 = vunpack.i.l.bf16 %v609_v56  ;;  %v606_v60 = vunpack.i.h.bf16 %v604_v57  ;;  %v605_v61 = vunpack.i.l.bf16 %v604_v57  ;;  %539 = vmatprep.subr.bf16.mxu1 %v646_v9 }
  0x9a   : > { %v253_v62 = vsel %vm251_vm7, %v610_v59, %v611_v58  ;;  %v238_v63 = vsel %vm236_vm8, %v605_v61, %v606_v60 }
  0x9b   : > { %v619_v0 = vpop.permute.xlu1 %618  ;;  %v614_v1 = vpop.permute.xlu0 %613  ;;  %v281_v3 = vsel %vm270_vm4, %v238_v63, %v253_v62 }
  0x9c   : > { %v621_v4 = vunpack.i.h.bf16 %v619_v0  ;;  %v620_v5 = vunpack.i.l.bf16 %v619_v0  ;;  %v616_v6 = vunpack.i.h.bf16 %v614_v1  ;;  %v615_v7 = vunpack.i.l.bf16 %v614_v1 }
  0x9d   : > { %v532_v8 = vpack.c.bf16 %v281_v3, %v278_v2 }
  0x9e   : > { %v222_v10 = vsel %vm221_vm5, %v620_v5, %v600_v49  ;;  %v224_v12 = vsel %vm221_vm5, %v601_v48, %v621_v4  ;;  %v207_v9 = vsel %vm206_vm6, %v615_v7, %v595_v51  ;;  %v209_v13 = vsel %vm206_vm6, %v596_v50, %v616_v6 }
  0x9f   : > { %533 = vmatprep.subr.bf16.mxu0 %v532_v8  ;;  %v629_v14 = vpop.permute.xlu1 %628  ;;  %v624_v15 = vpop.permute.xlu0 %623  ;;  %v277_v26 = vsel %vm270_vm4, %v207_v9, %v222_v10  ;;  %v279_v28 = vsel %vm270_vm4, %v209_v13, %v224_v12 }
  0xa0   : > { %v631_v16 = vunpack.i.h.bf16 %v629_v14  ;;  %v630_v17 = vunpack.i.l.bf16 %v629_v14  ;;  %v626_v18 = vunpack.i.h.bf16 %v624_v15  ;;  %v625_v19 = vunpack.i.l.bf16 %v624_v15 }
  0xa2   : > { %v252_v20 = vsel %vm251_vm7, %v630_v17, %v610_v59  ;;  %v254_v21 = vsel %vm251_vm7, %v611_v58, %v631_v16  ;;  %v237_v22 = vsel %vm236_vm8, %v625_v19, %v605_v61  ;;  %v239_v23 = vsel %vm236_vm8, %v606_v60, %v626_v18 }
  0xa3   : > { %v263_v24 = vpop.permute.xlu1 %262  ;;  %v261_v25 = vpop.permute.xlu0 %260  ;;  %v280_v27 = vsel %vm270_vm4, %v237_v22, %v252_v20  ;;  %v282_v29 = vsel %vm270_vm4, %v239_v23, %v254_v21 }
  0xa4   : > { %v268_v30 = vsel %vm266_vm9, %v261_v25, %v263_v24  ;;  %v534_v31 = vpack.c.bf16 %v280_v27, %v277_v26  ;;  %v540_v32 = vpack.c.bf16 %v282_v29, %v279_v28 }
  0xa6   : > { %535 = vmatpush1.bf16.msra.mxu0 %v534_v31  ;;  %541 = vmatpush3.bf16.msra.mxu1 %v540_v32 }
  0xa7   : > { %v265_v33 = vpop.permute.xlu1 %264  ;;  %v259_v34 = vpop.permute.xlu0 %258  ;;  %501 = vmatprep.subr.msk.mxu0 %vm270_vm4, %v268_v30  ;;  %523 = vmatprep.subr.mxu1 %v652_v11 }
  0xa8   : > { %v269_v35 = vsel %vm266_vm9, %v263_v24, %v265_v33  ;;  %v267_v36 = vsel %vm266_vm9, %v259_v34, %v261_v25 }
  0xaa   : > { %502 = vmatpush1.msk.msra.mxu0 %vm270_vm4, %v267_v36  ;;  %524 = vmatpush3.msk.msra.mxu1 %vm270_vm4, %v269_v35 }
  0xab   : > { %503 = vmatmul.mubr.msk.f32.vlgmr.msra.gmra.mrb[0].mxu0 %vm284_vm10, %v283_v37  ;;  %526 = vmatmul.mubr.msk.f32.vlgmr.msra.gmra.mrb[0].mxu1 %vm284_vm10, %v283_v37 }
 0x17e   : > { %v360_v11 = vpop.f32.mrb[0].mxu0  ;;  %v431_v38 = vpop.f32.mrb[0].mxu1 }
 0x17f   : > { %435 = vst [vmem:[%s143_s28] sm:$0xff] %v360_v11  ;;  %437 = vst [vmem:[%s143_s28 + $0x10] sm:$0xff] %v431_v38  ;;  %v362_v39 = vpop.f32.mrb[1].mxu0  ;;  %v527_v40 = vpop.f32.mrb[1].mxu1 }
 0x180   : > { %436 = vst [vmem:[%s143_s28 + $0x8] sm:$0xff] %v362_v39 }
 0x181 PF: > { %s12_s9 = sadd.s32 1, %s642_s9  }
 0x182   : > { %p9_p4 = scmp.ge.s32.totalorder %s12_s9, 4  }
 0x184   :  { %11 = sbr.rel (!%p9_p4) target bundleno = 1 (0x1), region = 58 }

</bundles_post_ra>
